<compile_context>
chip_gen: v6e
topology: v6e:2x2x1
jax: 0.10.0
libtpu: 0.0.40
codegen_flags: <defaults>
</compile_context>

<pallas_src>
import jax
import jax.numpy as jnp
from jax.experimental import pallas as pl
from jax.experimental.pallas import tpu as pltpu

# ---- model hyper-params (small, consistent with the module) ----------------
B = 2              # batch
IN_CH = 16         # in_channels
MID_CH = 32        # mid_channels
OUT_CH = 32        # out_channels (speaker embedding dim)
OUT_FEATURES = 8   # out_features (num speakers)
NUM_BLOCKS = 2     # num_blocks
T = 18             # input time steps (divisible by 3**NUM_BLOCKS)
BN_EPS = 1e-5

# ---- packed parameter-slab layout (row offsets are static Python ints) -----
SLAB_COLS = max(MID_CH, OUT_CH, OUT_FEATURES)        # 32 lanes
ROW_W0 = 0
ROW_RW1 = ROW_W0 + IN_CH                             # 16
ROW_RW2 = ROW_RW1 + NUM_BLOCKS * MID_CH              # 80
ROW_SPKW = ROW_RW2 + NUM_BLOCKS * MID_CH             # 144
ROW_LINW = ROW_SPKW + MID_CH                         # 176
ROW_B0 = ROW_LINW + OUT_CH                           # 208
ROW_RB1 = ROW_B0 + 1                                 # 209
ROW_RB2 = ROW_RB1 + NUM_BLOCKS                       # 211
ROW_SPKB = ROW_RB2 + NUM_BLOCKS                      # 213
ROW_LINB = ROW_SPKB + 1                              # 214
SLAB_ROWS = ((ROW_LINB + 1 + 7) // 8) * 8            # 216 (sublane aligned)

OUT_LANES = 128                                      # lane-dense output slab


# ---------------------------------------------------------------------------
# Pallas kernel: full forward for the whole batch in one grid step.
# ---------------------------------------------------------------------------
def speaker_encoder_kernel(scal_ref, x_ref, slab_ref, out_ref):
    # scal_ref : SMEM f32 (2*NUM_BLOCKS + B,) = [a1_0,a2_0,...,1/len_0,1/len_1]
    # x_ref    : VMEM (B*T, IN_CH)
    # slab_ref : VMEM (SLAB_ROWS, SLAB_COLS) packed folded weights/biases
    # out_ref  : VMEM (B, 128) = [softmax logits | v | zero pad]
    Bn = out_ref.shape[0]

    x = x_ref[...]                                                  # (B*T, Cin)

    # ---- prolog: (BatchNorm1d + 1x1 Conv1d) folded into w0f / b0f ----------
    w0 = slab_ref[ROW_W0:ROW_W0 + IN_CH, :MID_CH]
    b0 = slab_ref[ROW_B0:ROW_B0 + 1, :MID_CH]
    y = jnp.dot(x, w0, preferred_element_type=jnp.float32) + b0     # (B*T, MID)

    # ---- residual blocks: conv(+BN folded) -> PReLU -> conv(+BN folded)
    #      -> +residual -> PReLU -> MaxPool1d(3) ------------------------------
    for i in range(NUM_BLOCKS):
        a1 = scal_ref[2 * i]
        a2 = scal_ref[2 * i + 1]
        rw1 = slab_ref[ROW_RW1 + i * MID_CH:ROW_RW1 + (i + 1) * MID_CH, :MID_CH]
        rb1 = slab_ref[ROW_RB1 + i:ROW_RB1 + i + 1, :MID_CH]
        rw2 = slab_ref[ROW_RW2 + i * MID_CH:ROW_RW2 + (i + 1) * MID_CH, :MID_CH]
        rb2 = slab_ref[ROW_RB2 + i:ROW_RB2 + i + 1, :MID_CH]

        h = jnp.dot(y, rw1, preferred_element_type=jnp.float32) + rb1
        h = jnp.where(h >= 0, h, a1 * h)                            # PReLU1
        h = jnp.dot(h, rw2, preferred_element_type=jnp.float32) + rb2
        z = y + h                                                   # residual
        z = jnp.where(z >= 0, z, a2 * z)                            # PReLU2
        # MaxPool1d(kernel=3, stride=3) along time (rows); pool groups never
        # cross sample boundaries because each per-sample length % 3 == 0.
        tp = z.shape[0] // 3
        y = jnp.max(z[: tp * 3].reshape(tp, 3, z.shape[1]), axis=1)

    # ---- speaker 1x1 conv hoisted out of the length-normalized pooling ------
    #   v[b] = ((sum_t y[b,t]) @ Wspk + Tf * bspk) * (1 / len[b])
    Tf = y.shape[0] // Bn
    ysum = jnp.sum(y.reshape(Bn, Tf, y.shape[1]), axis=1)           # (B, MID)
    spk_w = slab_ref[ROW_SPKW:ROW_SPKW + MID_CH, :OUT_CH]
    spk_b = slab_ref[ROW_SPKB:ROW_SPKB + 1, :OUT_CH]
    v_un = jnp.dot(ysum, spk_w, preferred_element_type=jnp.float32)
    v_un = v_un + jnp.float32(Tf) * spk_b
    v = jnp.concatenate(
        [v_un[b:b + 1, :] * scal_ref[2 * NUM_BLOCKS + b] for b in range(Bn)],
        axis=0)                                                     # (B, OUT_CH)

    # ---- epilog: Linear + Softmax -------------------------------------------
    lin_w = slab_ref[ROW_LINW:ROW_LINW + OUT_CH, :OUT_FEATURES]
    lin_b = slab_ref[ROW_LINB:ROW_LINB + 1, :OUT_FEATURES]
    logits = jnp.dot(v, lin_w, preferred_element_type=jnp.float32) + lin_b
    logits = logits - jnp.max(logits, axis=-1, keepdims=True)
    e = jnp.exp(logits)
    probs = e * pl.reciprocal(jnp.sum(e, axis=-1, keepdims=True), approx=False)

    # single lane-dense 128-wide store: [softmax | v | zeros]
    pad = jnp.zeros((Bn, OUT_LANES - OUT_FEATURES - OUT_CH), jnp.float32)
    out_ref[...] = jnp.concatenate([probs, v, pad], axis=-1)


# ---------------------------------------------------------------------------
# Host-side folding: BN + biases into weights, pack into one slab.
# ---------------------------------------------------------------------------
def fold_params(p):
    def pad_cols(a):
        return jnp.pad(a, ((0, 0), (0, SLAB_COLS - a.shape[1])))

    # prolog: (x*s + t) @ W + b  ==  x @ (s[:,None]*W) + (t@W + b)
    w0f = p["bn0_scale"].reshape(IN_CH, 1) * p["w0"]
    b0f = p["b0"] + p["bn0_shift"] @ p["w0"]

    rw1f, rb1f, rw2f, rb2f = [], [], [], []
    for i in range(NUM_BLOCKS):
        # (y@W + b)*s + sh  ==  y @ (W*s) + (b*s + sh)
        rw1f.append(p["rw1"][i] * p["rs1"][i])
        rb1f.append(p["rb1"][i] * p["rs1"][i] + p["rsh1"][i])
        rw2f.append(p["rw2"][i] * p["rs2"][i])
        rb2f.append(p["rb2"][i] * p["rs2"][i] + p["rsh2"][i])

    rows = [pad_cols(w0f)]
    rows += [pad_cols(w) for w in rw1f]
    rows += [pad_cols(w) for w in rw2f]
    rows += [pad_cols(p["spk_w"]), pad_cols(p["lin_w"])]
    rows += [pad_cols(b0f)]
    rows += [pad_cols(b) for b in rb1f]
    rows += [pad_cols(b) for b in rb2f]
    rows += [pad_cols(p["spk_b"]), pad_cols(p["lin_b"])]
    slab = jnp.concatenate(rows, axis=0)
    slab = jnp.pad(slab, ((0, SLAB_ROWS - slab.shape[0]), (0, 0)))
    prelu_flat = p["prelu"].reshape(-1)
    return slab.astype(jnp.float32), prelu_flat.astype(jnp.float32)


# ---------------------------------------------------------------------------
# Wrapper
# ---------------------------------------------------------------------------
@jax.jit
def speaker_encoder_forward(x_nct, audio_len, slab, prelu_flat):
    """x_nct: (B, IN_CH, T) float32 (PyTorch NCT layout); audio_len: (B,)."""
    Bn, Cin, Tn = x_nct.shape
    x2d = jnp.transpose(x_nct, (0, 2, 1)).reshape(Bn * Tn, Cin).astype(jnp.float32)
    scal = jnp.concatenate(
        [prelu_flat, (1.0 / audio_len).astype(jnp.float32)])   # (2*NB + B,)

    out = pl.pallas_call(
        speaker_encoder_kernel,
        grid=(1,),
        in_specs=[
            pl.BlockSpec(memory_space=pltpu.SMEM),                       # scalars
            pl.BlockSpec((Bn * Tn, Cin), lambda i: (0, 0)),              # x
            pl.BlockSpec((SLAB_ROWS, SLAB_COLS), lambda i: (0, 0)),      # params
        ],
        out_specs=pl.BlockSpec((Bn, OUT_LANES), lambda i: (0, 0)),
        out_shape=jax.ShapeDtypeStruct((Bn, OUT_LANES), jnp.float32),
        compiler_params=pltpu.CompilerParams(
            dimension_semantics=("arbitrary",)),
    )(scal, x2d, slab)

    logits = out[:, :OUT_FEATURES]                              # (B, OUT_F)
    v = out[:, OUT_FEATURES:OUT_FEATURES + OUT_CH]              # (B, OUT_CH)
    return logits, v[..., None]                                 # (logits, v.unsqueeze(-1))


# ---------------------------------------------------------------------------
# Deterministic parameter construction (BN folded to scale/shift, eval mode)
# ---------------------------------------------------------------------------
def init_params(key):
    ks = iter(jax.random.split(key, 64))

    def rnd(shape, scale=0.2):
        return scale * jax.random.normal(next(ks), shape, dtype=jnp.float32)

    def bn_fold(c):
        gamma = 1.0 + rnd((c,), 0.1)
        beta = rnd((c,), 0.1)
        mean = rnd((c,), 0.1)
        var = 1.0 + jnp.abs(rnd((c,), 0.1))
        scale = gamma / jnp.sqrt(var + BN_EPS)
        shift = beta - mean * scale
        return scale[None, :], shift[None, :]

    p = {}
    p["bn0_scale"], p["bn0_shift"] = bn_fold(IN_CH)
    p["w0"] = rnd((IN_CH, MID_CH))            # Conv1d weight stored as (Cin, Cout)
    p["b0"] = rnd((1, MID_CH))

    rw1, rb1, rs1, rsh1 = [], [], [], []
    rw2, rb2, rs2, rsh2 = [], [], [], []
    prelu = []
    for _ in range(NUM_BLOCKS):
        rw1.append(rnd((MID_CH, MID_CH)));  rb1.append(rnd((1, MID_CH)))
        s, sh = bn_fold(MID_CH); rs1.append(s); rsh1.append(sh)
        rw2.append(rnd((MID_CH, MID_CH)));  rb2.append(rnd((1, MID_CH)))
        s, sh = bn_fold(MID_CH); rs2.append(s); rsh2.append(sh)
        prelu.append(0.25 + rnd((2,), 0.05))

    p["rw1"] = jnp.stack(rw1);   p["rb1"] = jnp.stack(rb1)
    p["rs1"] = jnp.stack(rs1);   p["rsh1"] = jnp.stack(rsh1)
    p["rw2"] = jnp.stack(rw2);   p["rb2"] = jnp.stack(rb2)
    p["rs2"] = jnp.stack(rs2);   p["rsh2"] = jnp.stack(rsh2)
    p["prelu"] = jnp.stack(prelu)

    p["spk_w"] = rnd((MID_CH, OUT_CH));       p["spk_b"] = rnd((1, OUT_CH))
    p["lin_w"] = rnd((OUT_CH, OUT_FEATURES)); p["lin_b"] = rnd((1, OUT_FEATURES))
    return p


# ---------------------------------------------------------------------------
# Pure-JAX reference (mirrors the PyTorch forward semantics, unfolded form)
# ---------------------------------------------------------------------------
def reference_forward(x_nct, audio_len, p):
    x = jnp.transpose(x_nct, (0, 2, 1)).astype(jnp.float32)     # (B, T, Cin)
    h = x * p["bn0_scale"] + p["bn0_shift"]
    y = h @ p["w0"] + p["b0"]
    for i in range(NUM_BLOCKS):
        a1, a2 = p["prelu"][i, 0], p["prelu"][i, 1]
        t = y @ p["rw1"][i] + p["rb1"][i]
        t = t * p["rs1"][i] + p["rsh1"][i]
        t = jnp.where(t >= 0, t, a1 * t)
        t = t @ p["rw2"][i] + p["rb2"][i]
        t = t * p["rs2"][i] + p["rsh2"][i]
        z = y + t
        z = jnp.where(z >= 0, z, a2 * z)
        Bn, Tc, C = z.shape
        tp = Tc // 3
        y = jnp.max(z[:, : tp * 3].reshape(Bn, tp, 3, C), axis=2)
    v = y @ p["spk_w"] + p["spk_b"]
    v = jnp.sum(v, axis=1) / audio_len[:, None]
    logits = jax.nn.softmax(v @ p["lin_w"] + p["lin_b"], axis=-1)
    return logits, v[..., None]


if __name__ == "__main__":
    key = jax.random.PRNGKey(0)
    kx, kp = jax.random.split(key, 2)

    params = init_params(kp)
    slab, prelu_flat = fold_params(params)

    # Input in PyTorch's NCT layout (batch, channels, time).
    x_nct = jax.random.normal(kx, (B, IN_CH, T), dtype=jnp.float32)
    audio_len = jnp.array([18.0, 15.0], dtype=jnp.float32)   # per-sample lengths

    logits, v = speaker_encoder_forward(x_nct, audio_len, slab, prelu_flat)
    jax.block_until_ready((logits, v))

    ref_logits, ref_v = reference_forward(x_nct, audio_len, params)
    assert logits.shape == (B, OUT_FEATURES) and v.shape == (B, OUT_CH, 1)
    # Slightly looser tolerance: BN/bias folding reassociates f32 arithmetic.
    assert jnp.allclose(logits, ref_logits, atol=1e-4, rtol=1e-3), (
        float(jnp.max(jnp.abs(logits - ref_logits))))
    assert jnp.allclose(v, ref_v, atol=1e-4, rtol=1e-3), (
        float(jnp.max(jnp.abs(v - ref_v))))

    print("KERNEL_OK")
</pallas_src>

<mosaic_0001>
module attributes {stable_mosaic.version = 11 : i64} {
  func.func @speaker_encoder_kernel(%arg0: i32, %arg1: memref<6xf32, #tpu.memory_space<smem>>, %arg2: memref<36x16xf32, #tpu.memory_space<vmem>>, %arg3: memref<216x32xf32, #tpu.memory_space<vmem>>, %arg4: memref<2x128xf32, #tpu.memory_space<vmem>>) attributes {dimension_semantics = [#tpu.dimension_semantics<arbitrary>], iteration_bounds = array<i64: 1>, scalar_prefetch = 0 : i64, scratch_operands = 0 : i64, tpu.core_type = #tpu.core_type<tc>, window_params = [{transform_indices = @transform_0, window_bounds = array<i64: 6>}, {pipeline_mode = #tpu.pipeline_mode<synchronous>, transform_indices = @transform_1, window_bounds = array<i64: 36, 16>}, {pipeline_mode = #tpu.pipeline_mode<synchronous>, transform_indices = @transform_2, window_bounds = array<i64: 216, 32>}, {pipeline_mode = #tpu.pipeline_mode<synchronous>, transform_indices = @transform_3, window_bounds = array<i64: 2, 128>}]} {
    %c0 = arith.constant 0 : index
    %c0_0 = arith.constant 0 : index
    %0 = vector.load %arg2[%c0, %c0_0] : memref<36x16xf32, #tpu.memory_space<vmem>>, vector<36x16xf32>
    %c0_1 = arith.constant 0 : index
    %c0_2 = arith.constant 0 : index
    %1 = vector.load %arg3[%c0_1, %c0_2] : memref<216x32xf32, #tpu.memory_space<vmem>>, vector<16x32xf32>
    %c208 = arith.constant 208 : index
    %c0_3 = arith.constant 0 : index
    %2 = vector.load %arg3[%c208, %c0_3] : memref<216x32xf32, #tpu.memory_space<vmem>>, vector<1x32xf32>
    %cst = arith.constant dense<0.000000e+00> : vector<36x32xf32>
    %3 = tpu.matmul %0, %1, %cst {dimension_numbers = #tpu.dot_dimension_numbers<[1], [0], [0], [1], [0, 0, 1, 1], [], []>} : vector<36x16xf32>, vector<16x32xf32>, vector<36x32xf32> -> vector<36x32xf32>
    %4 = vector.broadcast %2 : vector<1x32xf32> to vector<36x32xf32>
    %5 = arith.addf %3, %4 : vector<36x32xf32>
    %c0_4 = arith.constant 0 : index
    %6 = memref.load %arg1[%c0_4] : memref<6xf32, #tpu.memory_space<smem>>
    %c1 = arith.constant 1 : index
    %7 = memref.load %arg1[%c1] : memref<6xf32, #tpu.memory_space<smem>>
    %c16 = arith.constant 16 : index
    %c0_5 = arith.constant 0 : index
    %8 = vector.load %arg3[%c16, %c0_5] : memref<216x32xf32, #tpu.memory_space<vmem>>, vector<32x32xf32>
    %c209 = arith.constant 209 : index
    %c0_6 = arith.constant 0 : index
    %9 = vector.load %arg3[%c209, %c0_6] : memref<216x32xf32, #tpu.memory_space<vmem>>, vector<1x32xf32>
    %c80 = arith.constant 80 : index
    %c0_7 = arith.constant 0 : index
    %10 = vector.load %arg3[%c80, %c0_7] : memref<216x32xf32, #tpu.memory_space<vmem>>, vector<32x32xf32>
    %c211 = arith.constant 211 : index
    %c0_8 = arith.constant 0 : index
    %11 = vector.load %arg3[%c211, %c0_8] : memref<216x32xf32, #tpu.memory_space<vmem>>, vector<1x32xf32>
    %cst_9 = arith.constant dense<0.000000e+00> : vector<36x32xf32>
    %12 = tpu.matmul %5, %8, %cst_9 {dimension_numbers = #tpu.dot_dimension_numbers<[1], [0], [0], [1], [0, 0, 1, 1], [], []>} : vector<36x32xf32>, vector<32x32xf32>, vector<36x32xf32> -> vector<36x32xf32>
    %13 = vector.broadcast %9 : vector<1x32xf32> to vector<36x32xf32>
    %14 = arith.addf %12, %13 : vector<36x32xf32>
    %cst_10 = arith.constant 0.000000e+00 : f32
    %15 = vector.broadcast %cst_10 : f32 to vector<36x32xf32>
    %16 = arith.cmpf oge, %14, %15 : vector<36x32xf32>
    %17 = vector.broadcast %6 : f32 to vector<36x32xf32>
    %18 = arith.mulf %17, %14 : vector<36x32xf32>
    %19 = arith.select %16, %14, %18 : vector<36x32xi1>, vector<36x32xf32>
    %cst_11 = arith.constant dense<0.000000e+00> : vector<36x32xf32>
    %20 = tpu.matmul %19, %10, %cst_11 {dimension_numbers = #tpu.dot_dimension_numbers<[1], [0], [0], [1], [0, 0, 1, 1], [], []>} : vector<36x32xf32>, vector<32x32xf32>, vector<36x32xf32> -> vector<36x32xf32>
    %21 = vector.broadcast %11 : vector<1x32xf32> to vector<36x32xf32>
    %22 = arith.addf %20, %21 : vector<36x32xf32>
    %23 = arith.addf %5, %22 : vector<36x32xf32>
    %cst_12 = arith.constant 0.000000e+00 : f32
    %24 = vector.broadcast %cst_12 : f32 to vector<36x32xf32>
    %25 = arith.cmpf oge, %23, %24 : vector<36x32xf32>
    %26 = vector.broadcast %7 : f32 to vector<36x32xf32>
    %27 = arith.mulf %26, %23 : vector<36x32xf32>
    %28 = arith.select %25, %23, %27 : vector<36x32xi1>, vector<36x32xf32>
    %29 = vector.shape_cast %28 : vector<36x32xf32> to vector<12x3x32xf32>
    %cst_13 = arith.constant dense<0xFF800000> : vector<12x32xf32>
    %30 = vector.multi_reduction <maximumf>, %29, %cst_13 [1] : vector<12x3x32xf32> to vector<12x32xf32>
    %c2 = arith.constant 2 : index
    %31 = memref.load %arg1[%c2] : memref<6xf32, #tpu.memory_space<smem>>
    %c3 = arith.constant 3 : index
    %32 = memref.load %arg1[%c3] : memref<6xf32, #tpu.memory_space<smem>>
    %c48 = arith.constant 48 : index
    %c0_14 = arith.constant 0 : index
    %33 = vector.load %arg3[%c48, %c0_14] : memref<216x32xf32, #tpu.memory_space<vmem>>, vector<32x32xf32>
    %c210 = arith.constant 210 : index
    %c0_15 = arith.constant 0 : index
    %34 = vector.load %arg3[%c210, %c0_15] : memref<216x32xf32, #tpu.memory_space<vmem>>, vector<1x32xf32>
    %c112 = arith.constant 112 : index
    %c0_16 = arith.constant 0 : index
    %35 = vector.load %arg3[%c112, %c0_16] : memref<216x32xf32, #tpu.memory_space<vmem>>, vector<32x32xf32>
    %c212 = arith.constant 212 : index
    %c0_17 = arith.constant 0 : index
    %36 = vector.load %arg3[%c212, %c0_17] : memref<216x32xf32, #tpu.memory_space<vmem>>, vector<1x32xf32>
    %cst_18 = arith.constant dense<0.000000e+00> : vector<12x32xf32>
    %37 = tpu.matmul %30, %33, %cst_18 {dimension_numbers = #tpu.dot_dimension_numbers<[1], [0], [0], [1], [0, 0, 1, 1], [], []>} : vector<12x32xf32>, vector<32x32xf32>, vector<12x32xf32> -> vector<12x32xf32>
    %38 = vector.broadcast %34 : vector<1x32xf32> to vector<12x32xf32>
    %39 = arith.addf %37, %38 : vector<12x32xf32>
    %cst_19 = arith.constant 0.000000e+00 : f32
    %40 = vector.broadcast %cst_19 : f32 to vector<12x32xf32>
    %41 = arith.cmpf oge, %39, %40 : vector<12x32xf32>
    %42 = vector.broadcast %31 : f32 to vector<12x32xf32>
    %43 = arith.mulf %42, %39 : vector<12x32xf32>
    %44 = arith.select %41, %39, %43 : vector<12x32xi1>, vector<12x32xf32>
    %cst_20 = arith.constant dense<0.000000e+00> : vector<12x32xf32>
    %45 = tpu.matmul %44, %35, %cst_20 {dimension_numbers = #tpu.dot_dimension_numbers<[1], [0], [0], [1], [0, 0, 1, 1], [], []>} : vector<12x32xf32>, vector<32x32xf32>, vector<12x32xf32> -> vector<12x32xf32>
    %46 = vector.broadcast %36 : vector<1x32xf32> to vector<12x32xf32>
    %47 = arith.addf %45, %46 : vector<12x32xf32>
    %48 = arith.addf %30, %47 : vector<12x32xf32>
    %cst_21 = arith.constant 0.000000e+00 : f32
    %49 = vector.broadcast %cst_21 : f32 to vector<12x32xf32>
    %50 = arith.cmpf oge, %48, %49 : vector<12x32xf32>
    %51 = vector.broadcast %32 : f32 to vector<12x32xf32>
    %52 = arith.mulf %51, %48 : vector<12x32xf32>
    %53 = arith.select %50, %48, %52 : vector<12x32xi1>, vector<12x32xf32>
    %54 = vector.shape_cast %53 : vector<12x32xf32> to vector<4x3x32xf32>
    %cst_22 = arith.constant dense<0xFF800000> : vector<4x32xf32>
    %55 = vector.multi_reduction <maximumf>, %54, %cst_22 [1] : vector<4x3x32xf32> to vector<4x32xf32>
    %56 = vector.shape_cast %55 : vector<4x32xf32> to vector<2x2x32xf32>
    %cst_23 = arith.constant dense<0.000000e+00> : vector<2x32xf32>
    %57 = vector.multi_reduction <add>, %56, %cst_23 [1] : vector<2x2x32xf32> to vector<2x32xf32>
    %c144 = arith.constant 144 : index
    %c0_24 = arith.constant 0 : index
    %58 = vector.load %arg3[%c144, %c0_24] : memref<216x32xf32, #tpu.memory_space<vmem>>, vector<32x32xf32>
    %c213 = arith.constant 213 : index
    %c0_25 = arith.constant 0 : index
    %59 = vector.load %arg3[%c213, %c0_25] : memref<216x32xf32, #tpu.memory_space<vmem>>, vector<1x32xf32>
    %cst_26 = arith.constant dense<0.000000e+00> : vector<2x32xf32>
    %60 = tpu.matmul %57, %58, %cst_26 {dimension_numbers = #tpu.dot_dimension_numbers<[1], [0], [0], [1], [0, 0, 1, 1], [], []>} : vector<2x32xf32>, vector<32x32xf32>, vector<2x32xf32> -> vector<2x32xf32>
    %cst_27 = arith.constant 2.000000e+00 : f32
    %61 = vector.broadcast %cst_27 : f32 to vector<1x32xf32>
    %62 = arith.mulf %61, %59 : vector<1x32xf32>
    %63 = vector.broadcast %62 : vector<1x32xf32> to vector<2x32xf32>
    %64 = arith.addf %60, %63 : vector<2x32xf32>
    %65 = vector.extract_strided_slice %64 {offsets = [0, 0], sizes = [1, 32], strides = [1, 1]} : vector<2x32xf32> to vector<1x32xf32>
    %c4 = arith.constant 4 : index
    %66 = memref.load %arg1[%c4] : memref<6xf32, #tpu.memory_space<smem>>
    %67 = vector.broadcast %66 : f32 to vector<1x32xf32>
    %68 = arith.mulf %65, %67 : vector<1x32xf32>
    %69 = vector.extract_strided_slice %64 {offsets = [1, 0], sizes = [1, 32], strides = [1, 1]} : vector<2x32xf32> to vector<1x32xf32>
    %c5 = arith.constant 5 : index
    %70 = memref.load %arg1[%c5] : memref<6xf32, #tpu.memory_space<smem>>
    %71 = vector.broadcast %70 : f32 to vector<1x32xf32>
    %72 = arith.mulf %69, %71 : vector<1x32xf32>
    %73 = tpu.concatenate %68, %72 in 0 : vector<1x32xf32>, vector<1x32xf32> -> vector<2x32xf32>
    %c176 = arith.constant 176 : index
    %c0_28 = arith.constant 0 : index
    %74 = vector.load %arg3[%c176, %c0_28] : memref<216x32xf32, #tpu.memory_space<vmem>>, vector<32x8xf32>
    %c214 = arith.constant 214 : index
    %c0_29 = arith.constant 0 : index
    %75 = vector.load %arg3[%c214, %c0_29] : memref<216x32xf32, #tpu.memory_space<vmem>>, vector<1x8xf32>
    %cst_30 = arith.constant dense<0.000000e+00> : vector<2x8xf32>
    %76 = tpu.matmul %73, %74, %cst_30 {dimension_numbers = #tpu.dot_dimension_numbers<[1], [0], [0], [1], [0, 0, 1, 1], [], []>} : vector<2x32xf32>, vector<32x8xf32>, vector<2x8xf32> -> vector<2x8xf32>
    %77 = vector.broadcast %75 : vector<1x8xf32> to vector<2x8xf32>
    %78 = arith.addf %76, %77 : vector<2x8xf32>
    %cst_31 = arith.constant dense<0xFF800000> : vector<2xf32>
    %79 = vector.multi_reduction <maximumf>, %78, %cst_31 [1] : vector<2x8xf32> to vector<2xf32>
    %80 = vector.shape_cast %79 : vector<2xf32> to vector<2x1xf32>
    %81 = vector.broadcast %80 : vector<2x1xf32> to vector<2x8xf32>
    %82 = arith.subf %78, %81 : vector<2x8xf32>
    %83 = math.exp %82 : vector<2x8xf32>
    %cst_32 = arith.constant dense<0.000000e+00> : vector<2xf32>
    %84 = vector.multi_reduction <add>, %83, %cst_32 [1] : vector<2x8xf32> to vector<2xf32>
    %85 = vector.shape_cast %84 : vector<2xf32> to vector<2x1xf32>
    %86 = tpu.reciprocal %85 : vector<2x1xf32> -> vector<2x1xf32>
    %87 = vector.broadcast %86 : vector<2x1xf32> to vector<2x8xf32>
    %88 = arith.mulf %83, %87 : vector<2x8xf32>
    %cst_33 = arith.constant 0.000000e+00 : f32
    %89 = vector.broadcast %cst_33 : f32 to vector<2x88xf32>
    %90 = tpu.concatenate %88, %73, %89 in 1 : vector<2x8xf32>, vector<2x32xf32>, vector<2x88xf32> -> vector<2x128xf32>
    %c0_34 = arith.constant 0 : index
    %c0_35 = arith.constant 0 : index
    %91 = vector.load %arg4[%c0_34, %c0_35] : memref<2x128xf32, #tpu.memory_space<vmem>>, vector<2x128xf32>
    tpu.vector_store %arg4[%c0_34, %c0_35], %90 {strides = array<i32>} : memref<2x128xf32, #tpu.memory_space<vmem>>, vector<2x128xf32>,
    return
  }
  func.func @transform_0(%arg0: i32) -> i32 {
    %c0_i32 = arith.constant 0 : i32
    %c0_i32_0 = arith.constant 0 : i32
    return %c0_i32 : i32
  }
  func.func @transform_1(%arg0: i32) -> (i32, i32) {
    %c0_i32 = arith.constant 0 : i32
    %c0_i32_0 = arith.constant 0 : i32
    %c0_i32_1 = arith.constant 0 : i32
    return %c0_i32, %c0_i32_0 : i32, i32
  }
  func.func @transform_2(%arg0: i32) -> (i32, i32) {
    %c0_i32 = arith.constant 0 : i32
    %c0_i32_0 = arith.constant 0 : i32
    %c0_i32_1 = arith.constant 0 : i32
    return %c0_i32, %c0_i32_0 : i32, i32
  }
  func.func @transform_3(%arg0: i32) -> (i32, i32) {
    %c0_i32 = arith.constant 0 : i32
    %c0_i32_0 = arith.constant 0 : i32
    %c0_i32_1 = arith.constant 0 : i32
    return %c0_i32, %c0_i32_0 : i32, i32
  }
}

</mosaic_0001>

<bundles_post_ra>
// kernel: speaker_encoder_forward.1
= control target key start
LH: loop header
LB: loop body
LE: loop exit
PB: predicated region body
PF: predicated region fallthrough
CT: control target
= control target key end

     0   :  { %8 = vsyncpa [#allocation3], 0  ;;  %s2177_s0 = inlined_call_operand.vmem [shape: f32[6], index: 0, kind: input, shape index: {}]   ;;  %s2178_s1 = inlined_call_operand.vmem [shape: f32[36,16], index: 1, kind: input, shape index: {}]   ;;  %s2179_s2 = inlined_call_operand.vmem [shape: f32[216,32], index: 2, kind: input, shape index: {}]   ;;  %s2180_s3 = inlined_call_operand.vmem [shape: f32[2,128], index: 3, kind: output, shape index: {}]  }
   0x1   :  { %s15_s14 = sshll.u32 %s2177_s0, 4  ;;  %s16_s14 = int_to_ptr.vmem [resolvable:$true] %s15_s14 }
   0x2   :  { %s1747_s15 = scalar_lea.vmem %s16_s14, 16  ;;  %p1752_p1 = scmp.lt.s32.totalorder %s16_s14, %s16_s14 }
   0x3   :  { %p1748_p0 = scmp.ne.s32.totalorder %s16_s14, %s1747_s15  ;;  %p1753_p2 = scmp.lt.s32.totalorder %s1747_s15, %s1747_s15 }
   0x5   :  { %p1754_p3 = por %p1753_p2, %p1752_p1 }
   0x7   :  { %p1755_p4 = pnand %p1754_p3, %p1748_p0 }
   0x9   :  { %1758 = shalt.err (!%p1755_p4)
}
   0xa   :  { %s1761_s16 = smov [#allocation2]  }
   0xb   :  { %18 = dma.vmem_to_smem %s16_s14, 16, %s1761_s16, [#allocation3]  }
   0xc   :  { %1759 = dma.done.wait [#allocation3], 16  }
   0xd   :  { %1760 = vsyncadd [#allocation3], 4294967280 }
   0xe   :  { %26 = sfence }
   0xf   :  { %v33_v0 = vld [vmem:[%s2179_s2 + $0x8] sm:$0xff]  ;;  %v1762_v1 = vmov 0.0   ;;  %v32_v2 = vld [vmem:[%s2179_s2] sm:$0xff]  ;;  %vm1763_vm0 = vmmov 0   ;;  %vm39_vm1 = vcmask 130048   ;;  %v29_v7 = vld [vmem:[%s2178_s1 + $0x10] sm:$0xff] }
  0x10   :  { %1629 = vmatprep.subr.mxu0 %v1762_v1  ;;  %1633 = vmatprep.mubr.msk.f32.mxu0 %vm1763_vm0, %v1762_v1  ;;  %v27_v3 = vld [vmem:[%s2178_s1] sm:$0xff]  ;;  %v150_v4 = vld [vmem:[%s2179_s2 + $0x28] sm:$0xff]  ;;  %v30_v8 = vld [vmem:[%s2178_s1 + $0x18] sm:$0xff]  ;;  %vm161_vm2 = vcmask 261120   ;;  %s145_s19 = sld [smem:[#allocation2]]  ;;  %vm926_vm10 = vcmask 256000  }
  0x11   :  { %1630 = vmatpush3.msra.mxu0 %v33_v0  ;;  %1648 = vmatprep.subr.mxu1 %v1762_v1  ;;  %v149_v5 = vld [vmem:[%s2179_s2 + $0x20] sm:$0xff]  ;;  %v28_v6 = vld [vmem:[%s2178_s1 + $0x8] sm:$0xff]  ;;  %v148_v10 = vld [vmem:[%s2179_s2 + $0x18] sm:$0xff]  ;;  %s1553_s30 = sld [smem:[#allocation2 + $0x1]]  ;;  %v1764_v63 = vmov 1966171168  }
  0x12   :  { %1631 = vmatprep.subr.mxu0 %v1762_v1  ;;  %1649 = vmatpush3.msra.mxu1 %v150_v4  ;;  %v31_v9 = vld [vmem:[%s2178_s1 + $0x20] sm:$0xf]  ;;  %v147_v11 = vld [vmem:[%s2179_s2 + $0x10] sm:$0xff]  ;;  %v155_v12 = vld [vmem:[%s2179_s2 + $0x68] sm:$0xff]  ;;  %v420_v0 = vunpack.c.l.s4 %v1764_v63  ;;  %vm1039_vm14 = vcmask 1041409   ;;  %vm1041_vm15 = vcmask 1042434  }
  0x13   :  { %1632 = vmatpush3.msra.mxu0 %v32_v2  ;;  %1650 = vmatprep.subr.mxu1 %v1762_v1  ;;  %v154_v13 = vld [vmem:[%s2179_s2 + $0x60] sm:$0xff]  ;;  %v153_v14 = vld [vmem:[%s2179_s2 + $0x58] sm:$0xff]  ;;  %v1547_v15 = vld [vmem:[%s2179_s2 + $0xd0] ss:$0 sm:$0xff]  ;;  %v422_v2 = vlaneseq  ;;  %s1569_s13 = sld [smem:[#allocation2 + $0x2]]  ;;  %s1765_s11 = smov 8  }
  0x14   :  { %1634 = vmatmul.mubr.msk.f32.vlgmr.msra.gmra.mxu0 %vm39_vm1, %v27_v3  ;;  %1651 = vmatpush3.msra.mxu1 %v149_v5  ;;  %v152_v31 = vld [vmem:[%s2179_s2 + $0x50] sm:$0xff]  ;;  %v1016_v59 = vld [vmem:[%s2179_s2 + $0x48] sm:$0xff]  ;;  %v1015_v60 = vld [vmem:[%s2179_s2 + $0x40] sm:$0xff]  ;;  %v421_v5 = vunpack.c.0.s8 %v420_v0  ;;  %s1570_s25 = sld [smem:[#allocation2 + $0x3]] }
  0x15   :  { %1636 = vmatprep.mubr.msk.f32.mxu0 %vm1763_vm0, %v1762_v1  ;;  %1652 = vmatprep.subr.mxu1 %v1762_v1  ;;  %v1554_v32 = vld [vmem:[%s2179_s2 + $0xd1] ss:$0 sm:$0xff]  ;;  %v1014_v61 = vld [vmem:[%s2179_s2 + $0x38] sm:$0xff]  ;;  %v1928_v3 = vld [vmem:[%s2179_s2 + $0xd3] ss:$0 sm:$0xff]  ;;  %s1578_s9 = sld [smem:[#allocation2 + $0x4]] }
  0x16   :  { %1656 = vmatprep.mubr.msk.f32.mxu1 %vm1763_vm0, %v1762_v1  ;;  %1671 = vmatprep.subr.mxu0 %v1762_v1  ;;  %v272_v34 = vstv %s145_s19  ;;  %v1013_v62 = vld [vmem:[%s2179_s2 + $0x30] sm:$0xff]  ;;  %s1579_s10 = sld [smem:[#allocation2 + $0x5]] }
  0x17   :  { %1653 = vmatpush3.msra.mxu1 %v148_v10  ;;  %1672 = vmatpush3.msra.mxu0 %v155_v12 }
  0x18   :  { %1637 = vmatmul.mubr.msk.f32.gmra.mxu0 %vm39_vm1, %v28_v6  ;;  %1654 = vmatprep.subr.mxu1 %v1762_v1  ;;  %v1930_v6 = vshrl.u32 %v422_v2, 7 }
  0x19   :  { %1639 = vmatprep.mubr.msk.f32.mxu0 %vm1763_vm0, %v1762_v1  ;;  %1655 = vmatpush3.msra.mxu1 %v147_v11 }
  0x1a   :  { %1673 = vmatprep.subr.mxu0 %v1762_v1  ;;  %1694 = vmatprep.subr.mxu1 %v1016_v59  ;;  %v1937_v11 = vsub.s32 %v421_v5, %v1930_v6 }
  0x1b   :  { %1674 = vmatpush3.msra.mxu0 %v154_v13 }
  0x1c   :  { %1640 = vmatmul.mubr.msk.f32.gmra.mxu0 %vm39_vm1, %v29_v7  ;;  %1675 = vmatprep.subr.mxu0 %v1762_v1 }
  0x1d   :  { %1642 = vmatprep.mubr.msk.f32.mxu0 %vm1763_vm0, %v1762_v1  ;;  %1676 = vmatpush3.msra.mxu0 %v153_v14 }
  0x1e   :  { %1677 = vmatprep.subr.mxu0 %v1762_v1 }
  0x1f   :  { %1678 = vmatpush3.msra.mxu0 %v152_v31 }
  0x20   :  { %1643 = vmatmul.mubr.msk.f32.gmra.mxu0 %vm39_vm1, %v30_v8  ;;  %1716 = vmatprep.subr.mxu0 %v1762_v1  ;;  %v1933_v8 = vstv %s1553_s30 }
  0x21   :  { %1645 = vmatprep.mubr.msk.f32.mxu0 %vm1763_vm0, %v1762_v1 }
  0x24   :  { %1646 = vmatmul.mubr.msk.f32.gmra.mxu0 %vm39_vm1, %v31_v9  ;;  %vm1043_vm1 = vcmask 1043459  }
  0x25   :  { %1679 = vmatprep.mubr.msk.f32.mxu0 %vm1763_vm0, %v1762_v1 }
  0xd4   :  { %v121_v16 = vpop.f32.mrf.mxu0 }
  0xd5   :  { %v1863_v17 = vadd.f32 %v1547_v15, %v121_v16 }
  0xd6   :  { %v1635_v18 = vpop.f32.mrf.mxu0 }
  0xd7   :  { %1657 = vmatmul.mubr.msk.f32.vlgmr.msra.gmra.mxu1 %vm161_vm2, %v1863_v17 }
  0xd8   :  { %v126_v19 = vpop.f32.mrf.mxu0  ;;  %1659 = vmatprep.mubr.msk.f32.mxu1 %vm1763_vm0, %v1762_v1  ;;  %1695 = vmatpush3.msra.mxu1 %v1016_v59 }
  0xd9   :  { %v1869_v20 = vadd.f32 %v1547_v15, %v126_v19  ;;  %1696 = vmatprep.subr.mxu1 %v1015_v60 }
  0xda   :  { %v1638_v21 = vpop.f32.mrf.mxu0  ;;  %1697 = vmatpush3.msra.mxu1 %v1015_v60 }
  0xdb   :  { %1660 = vmatmul.mubr.msk.f32.gmra.mxu1 %vm161_vm2, %v1869_v20  ;;  %1698 = vmatprep.subr.mxu1 %v1014_v61 }
  0xdc   :  { %v131_v22 = vpop.f32.mrf.mxu0  ;;  %1662 = vmatprep.mubr.msk.f32.mxu1 %vm1763_vm0, %v1762_v1  ;;  %1699 = vmatpush3.msra.mxu1 %v1014_v61 }
  0xdd   :  { %v1875_v23 = vadd.f32 %v1547_v15, %v131_v22  ;;  %1700 = vmatprep.subr.mxu1 %v1013_v62 }
  0xde   :  { %v1641_v24 = vpop.f32.mrf.mxu0  ;;  %1701 = vmatpush3.msra.mxu1 %v1013_v62 }
  0xdf   :  { %1663 = vmatmul.mubr.msk.f32.gmra.mxu1 %vm161_vm2, %v1875_v23 }
  0xe0   :  { %v136_v25 = vpop.f32.mrf.mxu0  ;;  %1665 = vmatprep.mubr.msk.f32.mxu1 %vm1763_vm0, %v1762_v1 }
  0xe1   :  { %v1881_v26 = vadd.f32 %v1547_v15, %v136_v25 }
  0xe2   :  { %v1644_v27 = vpop.f32.mrf.mxu0 }
  0xe3   :  { %1666 = vmatmul.mubr.msk.f32.gmra.mxu1 %vm161_vm2, %v1881_v26 }
  0xe4   :  { %v141_v28 = vpop.f32.mrf.mxu0  ;;  %1668 = vmatprep.mubr.msk.f32.mxu1 %vm1763_vm0, %v1762_v1 }
  0xe5   :  { %v1887_v29 = vadd.f32 %v1547_v15, %v141_v28 }
  0xe6   :  { %v1647_v30 = vpop.f32.mrf.mxu0 }
  0xe7   :  { %1669 = vmatmul.mubr.msk.f32.gmra.mxu1 %vm161_vm2, %v1887_v29 }
 0x197   :  { %v243_v33 = vpop.f32.mrf.mxu1 }
 0x198   :  { %v244_v35 = vadd.f32 %v1554_v32, %v243_v33 }
 0x199   :  { %v1658_v36 = vpop.f32.mrf.mxu1 }
 0x19a   :  { %vm267_vm3 = vcmp.ge.f32.partialorder %v244_v35, 0.0  ;;  %v273_v37 = vmul.f32 %v272_v34, %v244_v35 }
 0x19b   :  { %v248_v38 = vpop.f32.mrf.mxu1 }
 0x19c   :  { %v278_v39 = vsel %vm267_vm3, %v244_v35, %v273_v37  ;;  %v249_v40 = vadd.f32 %v1554_v32, %v248_v38  ;;  %vm1045_vm3 = vcmask 1044484  }
 0x19d   :  { %v1661_v41 = vpop.f32.mrf.mxu1  ;;  %1680 = vmatmul.mubr.msk.f32.vlgmr.msra.gmra.mxu0 %vm161_vm2, %v278_v39 }
 0x19e   :  { %vm268_vm4 = vcmp.ge.f32.partialorder %v249_v40, 0.0  ;;  %v274_v42 = vmul.f32 %v272_v34, %v249_v40  ;;  %1682 = vmatprep.mubr.msk.f32.mxu0 %vm1763_vm0, %v1762_v1 }
 0x19f   :  { %v253_v43 = vpop.f32.mrf.mxu1 }
 0x1a0   :  { %v254_v44 = vadd.f32 %v1554_v32, %v253_v43  ;;  %v279_v45 = vsel %vm268_vm4, %v249_v40, %v274_v42  ;;  %vm1047_vm4 = vcmask 1045509  }
 0x1a1   :  { %v1664_v46 = vpop.f32.mrf.mxu1  ;;  %1683 = vmatmul.mubr.msk.f32.gmra.mxu0 %vm161_vm2, %v279_v45 }
 0x1a2   :  { %vm269_vm5 = vcmp.ge.f32.partialorder %v254_v44, 0.0  ;;  %v275_v47 = vmul.f32 %v272_v34, %v254_v44  ;;  %1685 = vmatprep.mubr.msk.f32.mxu0 %vm1763_vm0, %v1762_v1 }
 0x1a3   :  { %v258_v48 = vpop.f32.mrf.mxu1 }
 0x1a4   :  { %v259_v49 = vadd.f32 %v1554_v32, %v258_v48  ;;  %v280_v50 = vsel %vm269_vm5, %v254_v44, %v275_v47  ;;  %vm1049_vm5 = vcmask 1046534  }
 0x1a5   :  { %v1667_v51 = vpop.f32.mrf.mxu1  ;;  %1686 = vmatmul.mubr.msk.f32.gmra.mxu0 %vm161_vm2, %v280_v50 }
 0x1a6   :  { %vm270_vm6 = vcmp.ge.f32.partialorder %v259_v49, 0.0  ;;  %v276_v52 = vmul.f32 %v272_v34, %v259_v49  ;;  %1688 = vmatprep.mubr.msk.f32.mxu0 %vm1763_vm0, %v1762_v1 }
 0x1a7   :  { %v263_v53 = vpop.f32.mrf.mxu1 }
 0x1a8   :  { %v264_v54 = vadd.f32 %v1554_v32, %v263_v53  ;;  %v281_v55 = vsel %vm270_vm6, %v259_v49, %v276_v52  ;;  %vm1051_vm6 = vcmask 1047559  }
 0x1a9   :  { %v1670_v56 = vpop.f32.mrf.mxu1  ;;  %1689 = vmatmul.mubr.msk.f32.gmra.mxu0 %vm161_vm2, %v281_v55 }
 0x1aa   :  { %vm271_vm7 = vcmp.ge.f32.partialorder %v264_v54, 0.0  ;;  %v277_v57 = vmul.f32 %v272_v34, %v264_v54  ;;  %1691 = vmatprep.mubr.msk.f32.mxu0 %vm1763_vm0, %v1762_v1 }
 0x1ac   :  { %v282_v58 = vsel %vm271_vm7, %v264_v54, %v277_v57 }
 0x1ad   :  { %1692 = vmatmul.mubr.msk.f32.gmra.mxu0 %vm161_vm2, %v282_v58 }
 0x1ae   :  { %1724 = vmatprep.mubr.msk.f32.mxu0 %vm1763_vm0, %v1762_v1 }
 0x25d   :  { %v368_v4 = vpop.f32.mrf.mxu0 }
 0x25e   :  { %v369_v7 = vadd.f32 %v1928_v3, %v368_v4 }
 0x25f   :  { %v1681_v9 = vpop.f32.mrf.mxu0 }
 0x260   :  { %v392_v10 = vadd.f32 %v369_v7, %v1863_v17 }
 0x261   :  { %v373_v12 = vpop.f32.mrf.mxu0 }
 0x262   :  { %vm397_vm8 = vcmp.ge.f32.partialorder %v392_v10, 0.0  ;;  %v403_v13 = vmul.f32 %v1933_v8, %v392_v10  ;;  %v374_v14 = vadd.f32 %v1928_v3, %v373_v12 }
 0x263   :  { %v1684_v15 = vpop.f32.mrf.mxu0 }
 0x264   :  { %v408_v16 = vsel %vm397_vm8, %v392_v10, %v403_v13  ;;  %v393_v18 = vadd.f32 %v374_v14, %v1869_v20 }
 0x265   :  { %v418_v19 = vcombine.high %v408_v16, %v408_v16  ;;  %v425_v21 = vrot.slane %v408_v16, %v1937_v11  ;;  %v378_v22 = vpop.f32.mrf.mxu0 }
 0x266   :  { %vm398_vm9 = vcmp.ge.f32.partialorder %v393_v18, 0.0  ;;  %v404_v17 = vmul.f32 %v1933_v8, %v393_v18  ;;  %v379_v24 = vadd.f32 %v1928_v3, %v378_v22 }
 0x267   :  { %v432_v25 = vrot.slane %v418_v19, %v1937_v11  ;;  %v433_v27 = vcombine.high %v425_v21, %v425_v21  ;;  %v441_v28 = vrot.slane %v425_v21, %v1937_v11  ;;  %v1687_v30 = vpop.f32.mrf.mxu0 }
 0x268   :  { %v409_v31 = vsel %vm398_vm9, %v393_v18, %v404_v17  ;;  %v394_v32 = vadd.f32 %v379_v24, %v1875_v23 }
 0x269   :  { %v434_v20 = vcombine.high %v432_v25, %v432_v25  ;;  %v448_v33 = vrot.slane %v432_v25, %v1937_v11  ;;  %v455_v34 = vrot.slane %v433_v27, %v1937_v11  ;;  %v463_v35 = vcombine.high %v441_v28, %v441_v28  ;;  %v383_v36 = vpop.f32.mrf.mxu0 }
 0x26a   :  { %v467_v37 = vcombine.high %v409_v31, %v409_v31  ;;  %v474_v38 = vrot.slane %v409_v31, %v1937_v11  ;;  %vm399_vm11 = vcmp.ge.f32.partialorder %v394_v32, 0.0  ;;  %v405_v39 = vmul.f32 %v1933_v8, %v394_v32 }
 0x26b   :  { %v462_v40 = vrot.slane %v434_v20, %v1937_v11  ;;  %v465_v41 = vcombine.high %v455_v34, %v455_v34  ;;  %v638_v42 = vcombine.low %v441_v28, %v455_v34  ;;  %v652_v43 = vrot.slane %v463_v35, %v1937_v11  ;;  %v1690_v23 = vpop.f32.mrf.mxu0 }
 0x26c   :  { %v481_v44 = vrot.slane %v467_v37, %v1937_v11  ;;  %v482_v45 = vcombine.high %v474_v38, %v474_v38  ;;  %v490_v46 = vrot.slane %v474_v38, %v1937_v11  ;;  %v410_v47 = vsel %vm399_vm11, %v394_v32, %v405_v39 }
 0x26d   :  { %v645_v48 = vrot.slane %v638_v42, %v1937_v11  ;;  %v661_v49 = vcombine.low %v465_v41, %v448_v33  ;;  %v675_v50 = vrot.slane %v462_v40, %v1937_v11  ;;  %v1566_v51 = vcombine.high %v448_v33, %v462_v40  ;;  %v388_v52 = vpop.f32.mrf.mxu0 }
 0x26e   :  { %v483_v53 = vcombine.high %v481_v44, %v481_v44  ;;  %v497_v54 = vrot.slane %v481_v44, %v1937_v11  ;;  %v504_v55 = vrot.slane %v482_v45, %v1937_v11  ;;  %v512_v56 = vcombine.high %v490_v46, %v490_v46 }
 0x26f   :  { %v653_v57 = vcombine.low %v645_v48, %v652_v43  ;;  %v668_v58 = vrot.slane %v661_v49, %v1937_v11  ;;  %v691_v59 = vrot.slane %v1566_v51, %v1937_v11  ;;  %v698_v60 = vrot.slane %v490_v46, %v1937_v11  ;;  %v1693_v61 = vpop.f32.mrf.mxu0 }
 0x270   :  { %v511_v62 = vrot.slane %v483_v53, %v1937_v11  ;;  %v513_v63 = vcombine.high %v497_v54, %v497_v54  ;;  %v514_v0 = vcombine.high %v504_v55, %v504_v55  ;;  %v707_v2 = vcombine.low %v504_v55, %v512_v56 }
 0x271   :  { %v660_v4 = vrot.slane %v653_v57, %v1937_v11  ;;  %v676_v5 = vcombine.low %v668_v58, %v675_v50  ;;  %v699_v7 = vcombine.low %v691_v59, %v698_v60  ;;  %v516_v9 = vcombine.high %v410_v47, %v410_v47 }
 0x272   :  { %v714_v10 = vrot.slane %v707_v2, %v1937_v11  ;;  %v721_v12 = vrot.slane %v514_v0, %v1937_v11  ;;  %v730_v13 = vcombine.low %v497_v54, %v511_v62  ;;  %v744_v14 = vrot.slane %v513_v63, %v1937_v11 }
 0x273   :  { %v683_v15 = vrot.slane %v676_v5, %v1937_v11  ;;  %v927_v16 = vsel %vm926_vm10, %v660_v4, -inf  ;;  %v706_v18 = vrot.slane %v699_v7, %v1937_v11  ;;  %v515_v19 = vcombine.high %v511_v62, %v511_v62 }
 0x274   :  { %v928_v21 = vrot.slane %v927_v16, 4  ;;  %v1971_v22 = vcombine.low %v714_v10, %v721_v12  ;;  %v737_v17 = vrot.slane %v730_v13, %v1937_v11  ;;  %v523_v24 = vrot.slane %v410_v47, %v1937_v11 }
 0x275   :  { %v934_v25 = vsel %vm926_vm10, %v683_v15, -inf  ;;  %v941_v27 = vsel %vm926_vm10, %v706_v18, -inf  ;;  %v530_v28 = vrot.slane %v516_v9, %v1937_v11  ;;  %v384_v30 = vadd.f32 %v1928_v3, %v383_v36 }
 0x276   :  { %v929_v31 = vmax.f32 %v927_v16, %v928_v21  ;;  %v935_v32 = vrot.slane %v934_v25, 4  ;;  %v729_v20 = vrot.slane %v1971_v22, %v1937_v11  ;;  %v745_v33 = vcombine.low %v737_v17, %v744_v14 }
 0x277   :  { %v942_v34 = vrot.slane %v941_v27, 4  ;;  %v531_v35 = vcombine.high %v523_v24, %v523_v24  ;;  %v532_v37 = vcombine.high %v530_v28, %v530_v28  ;;  %v539_v38 = vrot.slane %v523_v24, %v1937_v11 }
 0x278   :  { %v930_v39 = vrot.slane %v929_v31, 2  ;;  %v936_v40 = vmax.f32 %v934_v25, %v935_v32  ;;  %v752_v41 = vrot.slane %v745_v33, %v1937_v11  ;;  %v546_v42 = vrot.slane %v530_v28, %v1937_v11 }
 0x279   :  { %v943_v43 = vmax.f32 %v941_v27, %v942_v34  ;;  %v553_v36 = vrot.slane %v531_v35, %v1937_v11  ;;  %v560_v23 = vrot.slane %v532_v37, %v1937_v11  ;;  %v753_v44 = vcombine.low %v515_v19, %v539_v38 }
 0x27a   :  { %v931_v45 = vmax.f32 %v929_v31, %v930_v39  ;;  %v937_v46 = vrot.slane %v936_v40, 2  ;;  %v562_v47 = vcombine.high %v546_v42, %v546_v42  ;;  %v790_v48 = vrot.slane %v546_v42, %v1937_v11 }
 0x27b   :  { %v944_v49 = vrot.slane %v943_v43, 2  ;;  %v564_v50 = vcombine.high %v560_v23, %v560_v23  ;;  %v760_v51 = vrot.slane %v753_v44, %v1937_v11  ;;  %v767_v53 = vrot.slane %v553_v36, %v1937_v11 }
 0x27c   :  { %v1567_v54 = vcombine.high %v539_v38, %v553_v36  ;;  %v799_v55 = vcombine.low %v560_v23, %v562_v47  ;;  %v395_v56 = vadd.f32 %v384_v30, %v1881_v26  ;;  %v389_v57 = vadd.f32 %v1928_v3, %v388_v52 }
 0x27d   :  { %v945_v58 = vmax.f32 %v943_v43, %v944_v49  ;;  %v768_v59 = vcombine.low %v760_v51, %v767_v53  ;;  %v813_v60 = vrot.slane %v564_v50, %v1937_v11  ;;  %v932_v61 = vrot.slane %v931_v45, 1 }
 0x27e   :  { %v783_v62 = vrot.slane %v1567_v54, %v1937_v11  ;;  %v806_v63 = vrot.slane %v799_v55, %v1937_v11  ;;  %vm400_vm12 = vcmp.ge.f32.partialorder %v395_v56, 0.0  ;;  %v406_v0 = vmul.f32 %v1933_v8, %v395_v56 }
 0x27f   :  { %v775_v2 = vrot.slane %v768_v59, %v1937_v11  ;;  %v396_v4 = vadd.f32 %v389_v57, %v1887_v29  ;;  %v1997_v5 = vmax.f32 %v931_v45, %v932_v61  ;;  %v938_v26 = vmax.f32 %v936_v40, %v937_v46 }
 0x280   :  { %v1999_v3 = vcombine.low %v783_v62, %v790_v48  ;;  %v411_v52 = vsel %vm400_vm12, %v395_v56, %v406_v0  ;;  %v2001_v7 = vcombine.low %v806_v63, %v813_v60  ;;  %v946_v9 = vrot.slane %v945_v58, 1 }
 0x281   :  { %v565_v10 = vcombine.high %v411_v52, %v411_v52  ;;  %v572_v12 = vrot.slane %v411_v52, %v1937_v11  ;;  %vm401_vm13 = vcmp.ge.f32.partialorder %v396_v4, 0.0  ;;  %v407_v13 = vmul.f32 %v1933_v8, %v396_v4 }
 0x282   :  { %v798_v14 = vrot.slane %v1999_v3, %v1937_v11  ;;  %v821_v29 = vrot.slane %v2001_v7, %v1937_v11  ;;  %v939_v15 = vrot.slane %v938_v26, 1  ;;  %v2009_v16 = vmax.f32 %v945_v58, %v946_v9 }
 0x283   :  { %v579_v18 = vrot.slane %v565_v10, %v1937_v11  ;;  %v580_v19 = vcombine.high %v572_v12, %v572_v12  ;;  %v588_v21 = vrot.slane %v572_v12, %v1937_v11  ;;  %v412_v22 = vsel %vm401_vm13, %v396_v4, %v407_v13 }
 0x284   :  { %v620_v17 = vrot.slane %v412_v22, %v1937_v11  ;;  %v2014_v24 = vmax.f32 %v938_v26, %v939_v15  ;;  %v948_v8 = vsel %vm926_vm10, %v729_v20, -inf  ;;  %v955_v25 = vsel %vm926_vm10, %v752_v41, -inf }
 0x285   :  { %v581_v27 = vcombine.high %v579_v18, %v579_v18  ;;  %v595_v28 = vrot.slane %v579_v18, %v1937_v11  ;;  %v602_v30 = vrot.slane %v580_v19, %v1937_v11  ;;  %v610_v31 = vcombine.high %v588_v21, %v588_v21 }
 0x286   :  { %v621_v32 = vcombine.high %v620_v17, %v620_v17  ;;  %v628_v33 = vrot.slane %v620_v17, %v1937_v11  ;;  %v949_v34 = vrot.slane %v948_v8, 4  ;;  %v956_v35 = vrot.slane %v955_v25, 4 }
 0x287   :  { %v609_v37 = vrot.slane %v581_v27, %v1937_v11  ;;  %v612_v38 = vcombine.high %v602_v30, %v602_v30  ;;  %v822_v39 = vcombine.low %v588_v21, %v602_v30  ;;  %v836_v40 = vrot.slane %v610_v31, %v1937_v11 }
 0x288   :  { %v635_v20 = vrot.slane %v621_v32, %v1937_v11  ;;  %v636_v41 = vcombine.high %v628_v33, %v628_v33  ;;  %v882_v42 = vrot.slane %v628_v33, %v1937_v11  ;;  %v950_v43 = vmax.f32 %v948_v8, %v949_v34 }
 0x289   :  { %v829_v36 = vrot.slane %v822_v39, %v1937_v11  ;;  %v845_v23 = vcombine.low %v612_v38, %v595_v28  ;;  %v859_v44 = vrot.slane %v609_v37, %v1937_v11  ;;  %v1568_v45 = vcombine.high %v595_v28, %v609_v37 }
 0x28a   :  { %v637_v46 = vcombine.high %v635_v20, %v635_v20  ;;  %v891_v47 = vcombine.low %v635_v20, %v636_v41  ;;  %v951_v48 = vrot.slane %v950_v43, 2  ;;  %v957_v49 = vmax.f32 %v955_v25, %v956_v35 }
 0x28b   :  { %v837_v50 = vcombine.low %v829_v36, %v836_v40  ;;  %v852_v51 = vrot.slane %v845_v23, %v1937_v11  ;;  %v875_v53 = vrot.slane %v1568_v45, %v1937_v11  ;;  %v962_v54 = vsel %vm926_vm10, %v775_v2, -inf }
 0x28c   :  { %v898_v55 = vrot.slane %v891_v47, %v1937_v11  ;;  %v905_v56 = vrot.slane %v637_v46, %v1937_v11  ;;  %v952_v57 = vmax.f32 %v950_v43, %v951_v48  ;;  %v958_v58 = vrot.slane %v957_v49, 2 }
 0x28d   :  { %v844_v59 = vrot.slane %v837_v50, %v1937_v11  ;;  %v860_v60 = vcombine.low %v852_v51, %v859_v44  ;;  %v883_v61 = vcombine.low %v875_v53, %v882_v42  ;;  %v963_v62 = vrot.slane %v962_v54, 4 }
 0x28e   :  { %v906_v63 = vcombine.low %v898_v55, %v905_v56  ;;  %v953_v0 = vrot.slane %v952_v57, 1  ;;  %v959_v4 = vmax.f32 %v957_v49, %v958_v58  ;;  %v969_v26 = vsel %vm926_vm10, %v798_v14, -inf }
 0x28f   :  { %v867_v3 = vrot.slane %v860_v60, %v1937_v11  ;;  %v983_v2 = vsel %vm926_vm10, %v844_v59, -inf  ;;  %v890_v52 = vrot.slane %v883_v61, %v1937_v11  ;;  %v964_v9 = vmax.f32 %v962_v54, %v963_v62 }
 0x290   :  { %v984_v10 = vrot.slane %v983_v2, 4  ;;  %v2037_v12 = vmax.f32 %v952_v57, %v953_v0  ;;  %v960_v13 = vrot.slane %v959_v4, 1  ;;  %v970_v15 = vrot.slane %v969_v26, 4 }
 0x291   :  { %v990_v18 = vsel %vm926_vm10, %v867_v3, -inf  ;;  %v997_v19 = vsel %vm926_vm10, %v890_v52, -inf  ;;  %v965_v21 = vrot.slane %v964_v9, 2  ;;  %v976_v14 = vsel %vm926_vm10, %v821_v29, -inf }
 0x292   :  { %v985_v22 = vmax.f32 %v983_v2, %v984_v10  ;;  %v991_v17 = vrot.slane %v990_v18, 4  ;;  %v998_v8 = vrot.slane %v997_v19, 4  ;;  %v2045_v25 = vmax.f32 %v959_v4, %v960_v13  ;;  %v1020_v10 = vld [vmem:[%s2179_s2 + $0x80] sm:$0xff]  ;;  %v1019_v13 = vld [vmem:[%s2179_s2 + $0x78] sm:$0xff] }
 0x293   :  { %v966_v27 = vmax.f32 %v964_v9, %v965_v21  ;;  %v971_v28 = vmax.f32 %v969_v26, %v970_v15  ;;  %v977_v30 = vrot.slane %v976_v14, 4  ;;  %v1040_v31 = vsel %vm1039_vm14, %v2014_v24, %v1997_v5  ;;  %v1021_v9 = vld [vmem:[%s2179_s2 + $0x88] sm:$0xff]  ;;  %v1018_v15 = vld [vmem:[%s2179_s2 + $0x70] sm:$0xff] }
 0x294   :  { %v999_v32 = vmax.f32 %v997_v19, %v998_v8  ;;  %v1042_v33 = vsel %vm1041_vm15, %v2009_v16, %v1040_v31  ;;  %v913_v7 = vrot.slane %v906_v63, %v1937_v11  ;;  %v986_v34 = vrot.slane %v985_v22, 2  ;;  %1705 = vmatprep.subr.mxu1 %v1021_v9  ;;  %v1349_v31 = vld [vmem:[%s2179_s2 + $0xa8] sm:$0xff] }
 0x295   :  { %v967_v29 = vrot.slane %v966_v27, 1  ;;  %v972_v35 = vrot.slane %v971_v28, 2  ;;  %v978_v37 = vmax.f32 %v976_v14, %v977_v30  ;;  %v1044_v38 = vsel %vm1043_vm1, %v2037_v12, %v1042_v33  ;;  %1717 = vmatpush3.msra.mxu0 %v1349_v31  ;;  %v1347_v33 = vld [vmem:[%s2179_s2 + $0x98] sm:$0xff] }
 0x296   :  { %v1046_v39 = vsel %vm1045_vm3, %v2045_v25, %v1044_v38  ;;  %v987_v40 = vmax.f32 %v985_v22, %v986_v34  ;;  %v992_v20 = vmax.f32 %v990_v18, %v991_v17  ;;  %v1000_v41 = vrot.slane %v999_v32, 2  ;;  %v1571_v18 = vld [vmem:[%s2179_s2 + $0xd2] ss:$0 sm:$0xff]  ;;  %1718 = vmatprep.subr.mxu0 %v1762_v1  ;;  %v1443_v34 = vld [vmem:[%s2179_s2 + $0xc8] sm:$0xff] }
 0x297   :  { %v2057_v42 = vmax.f32 %v966_v27, %v967_v29  ;;  %v973_v43 = vmax.f32 %v971_v28, %v972_v35  ;;  %v979_v36 = vrot.slane %v978_v37, 2  ;;  %v1004_v23 = vsel %vm926_vm10, %v913_v7, -inf  ;;  %v1346_v7 = vld [vmem:[%s2179_s2 + $0x90] sm:$0xff] }
 0x298   :  { %v993_v11 = vrot.slane %v992_v20, 2  ;;  %v1001_v44 = vmax.f32 %v999_v32, %v1000_v41  ;;  %v1005_v45 = vrot.slane %v1004_v23, 4  ;;  %v988_v48 = vrot.slane %v987_v40, 1  ;;  %v1348_v32 = vld [vmem:[%s2179_s2 + $0xa0] sm:$0xff]  ;;  %v1574_v29 = vld [vmem:[%s2179_s2 + $0xd4] ss:$0 sm:$0xff] }
 0x299   :  { %v974_v46 = vrot.slane %v973_v43, 1  ;;  %v980_v47 = vmax.f32 %v978_v37, %v979_v36  ;;  %v1048_v49 = vsel %vm1047_vm4, %v2057_v42, %v1046_v39  ;;  %v1137_v14 = vstv %s1569_s13  ;;  %1719 = vmatpush3.msra.mxu0 %v1348_v32 }
 0x29a   :  { %v994_v50 = vmax.f32 %v992_v20, %v993_v11  ;;  %v1002_v51 = vrot.slane %v1001_v44, 1  ;;  %v1006_v53 = vmax.f32 %v1004_v23, %v1005_v45  ;;  %v2069_v61 = vmax.f32 %v987_v40, %v988_v48  ;;  %1720 = vmatprep.subr.mxu0 %v1762_v1 }
 0x29b   :  { %v2062_v54 = vmax.f32 %v973_v43, %v974_v46  ;;  %v981_v55 = vrot.slane %v980_v47, 1  ;;  %1721 = vmatpush3.msra.mxu0 %v1347_v33  ;;  %vm1300_vm11 = vcmask 253952  }
 0x29c   :  { %v995_v56 = vrot.slane %v994_v50, 1  ;;  %v1007_v57 = vrot.slane %v1006_v53, 2  ;;  %v2067_v60 = vmax.f32 %v1001_v44, %v1002_v51  ;;  %1722 = vmatprep.subr.mxu0 %v1762_v1  ;;  %v1275_v44 = vstv %s1570_s25 }
 0x29d   :  { %v2064_v58 = vmax.f32 %v980_v47, %v981_v55  ;;  %v1050_v59 = vsel %vm1049_vm5, %v2062_v54, %v1048_v49  ;;  %1723 = vmatpush3.msra.mxu0 %v1346_v7 }
 0x29e   :  { %v996_v62 = vmax.f32 %v994_v50, %v995_v56  ;;  %v1008_v63 = vmax.f32 %v1006_v53, %v1007_v57 }
 0x29f   :  { %v1052_v0 = vsel %vm1051_vm6, %v2064_v58, %v1050_v59 }
 0x2a0   :  { %1702 = vmatprep.mubr.msk.f32.mxu1 %vm161_vm2, %v1052_v0  ;;  %v1009_v4 = vrot.slane %v1008_v63, 1  ;;  %v1053_v26 = vsel %vm1039_vm14, %v996_v62, %v2069_v61 }
 0x2a1   :  { %v1054_v3 = vsel %vm1041_vm15, %v2067_v60, %v1053_v26 }
 0x2a2   :  { %v1010_v2 = vmax.f32 %v1008_v63, %v1009_v4 }
 0x2a4   :  { %v1055_v52 = vsel %vm1043_vm1, %v1010_v2, %v1054_v3 }
 0x2a5   :  { %1703 = vmatmul.mubr.msk.f32.vlgmr.msra.gmra.mxu1 %vm161_vm2, %v1055_v52 }
 0x2a6   :  { %1706 = vmatpush3.msra.mxu1 %v1021_v9 }
 0x2a7   :  { %1707 = vmatprep.subr.mxu1 %v1020_v10 }
 0x2a8   :  { %1708 = vmatpush3.msra.mxu1 %v1020_v10 }
 0x2a9   :  { %1709 = vmatprep.subr.mxu1 %v1019_v13 }
 0x2aa   :  { %1710 = vmatpush3.msra.mxu1 %v1019_v13 }
 0x2ab   :  { %1711 = vmatprep.subr.mxu1 %v1018_v15 }
 0x2ac   :  { %1712 = vmatpush3.msra.mxu1 %v1018_v15 }
 0x2ad   :  { %1727 = vmatprep.subr.mxu1 %v1762_v1 }
 0x365   :  { %v1704_v19 = vpop.f32.mrf.mxu1 }
 0x366   :  { %v1132_v21 = vadd.f32 %v1704_v19, %v1571_v18 }
 0x367   :  { %v1126_v22 = vpop.f32.mrf.mxu1 }
 0x368   :  { %v1127_v17 = vadd.f32 %v1571_v18, %v1126_v22  ;;  %v1139_v8 = vmul.f32 %v1137_v14, %v1132_v21  ;;  %vm1136_vm7 = vcmp.ge.f32.partialorder %v1132_v21, 0.0 }
 0x36a   :  { %vm1135_vm8 = vcmp.ge.f32.partialorder %v1127_v17, 0.0  ;;  %v1138_v27 = vmul.f32 %v1137_v14, %v1127_v17  ;;  %v1141_v30 = vsel %vm1136_vm7, %v1132_v21, %v1139_v8 }
 0x36c   :  { %v1140_v28 = vsel %vm1135_vm8, %v1127_v17, %v1138_v27  ;;  %vm1331_vm8 = vcmask 254976  }
 0x36d   :  { %1713 = vmatprep.mubr.msk.f32.mxu1 %vm161_vm2, %v1140_v28 }
 0x36e   :  { %1714 = vmatmul.mubr.msk.f32.vlgmr.msra.gmra.mxu1 %vm161_vm2, %v1141_v30 }
 0x36f   :  { %1735 = vmatprep.mubr.msk.f32.mxu1 %vm1763_vm0, %v1762_v1  ;;  %1728 = vmatpush3.msra.mxu1 %v1443_v34 }
 0x370   :  { %1729 = vmatprep.subr.mxu1 %v1762_v1 }
 0x42e   :  { %v1715_v35 = vpop.f32.mrf.mxu1 }
 0x42f   :  { %v1224_v37 = vadd.f32 %v1715_v35, %v1574_v29 }
 0x430   :  { %v1218_v38 = vpop.f32.mrf.mxu1 }
 0x431   :  { %v1236_v39 = vrot.slane %v1224_v37, 1  ;;  %v1237_v40 = vrot.slane %v1224_v37, 2  ;;  %v1238_v20 = vrot.slane %v1224_v37, 3  ;;  %v1219_v41 = vadd.f32 %v1574_v29, %v1218_v38 }
 0x432   :  { %v1259_v11 = vadd.f32 %v1224_v37, %v2069_v61 }
 0x433   :  { %v1260_v43 = vadd.f32 %v1236_v39, %v996_v62  ;;  %v1261_v36 = vadd.f32 %v1237_v40, %v2067_v60  ;;  %v1262_v23 = vadd.f32 %v1238_v20, %v1010_v2  ;;  %v1229_v45 = vrot.slane %v1219_v41, 1 }
 0x434   :  { %v1231_v49 = vrot.slane %v1219_v41, 3  ;;  %v1232_v50 = vrot.slane %v1219_v41, 4  ;;  %v1234_v53 = vrot.slane %v1219_v41, 6  ;;  %v1235_v55 = vrot.slane %v1219_v41, 7 }
 0x435   :  { %vm1272_vm0 = vcmp.ge.f32.partialorder %v1260_v43, 0.0  ;;  %vm1273_vm9 = vcmp.ge.f32.partialorder %v1261_v36, 0.0  ;;  %vm1274_vm10 = vcmp.ge.f32.partialorder %v1262_v23, 0.0  ;;  %v1285_v46 = vmul.f32 %v1275_v44, %v1260_v43 }
 0x436   :  { %v1286_v47 = vmul.f32 %v1275_v44, %v1261_v36  ;;  %v1287_v48 = vmul.f32 %v1275_v44, %v1262_v23  ;;  %v1230_v56 = vrot.slane %v1219_v41, 2  ;;  %v1233_v60 = vrot.slane %v1219_v41, 5 }
 0x437   :  { %v1297_v51 = vsel %vm1272_vm0, %v1260_v43, %v1285_v46  ;;  %v1251_v63 = vadd.f32 %v1219_v41, %v1997_v5  ;;  %v1252_v0 = vadd.f32 %v1229_v45, %v2014_v24  ;;  %vm1271_vm12 = vcmp.ge.f32.partialorder %v1259_v11, 0.0 }
 0x438   :  { %v1298_v57 = vsel %vm1273_vm9, %v1261_v36, %v1286_v47  ;;  %v1299_v59 = vsel %vm1274_vm10, %v1262_v23, %v1287_v48  ;;  %v1316_v61 = vsel %vm1300_vm11, %v1297_v51, -inf  ;;  %v1253_v4 = vadd.f32 %v1230_v56, %v2009_v16 }
 0x439   :  { %v1317_v62 = vsel %vm1300_vm11, %v1298_v57, -inf  ;;  %v1254_v26 = vadd.f32 %v1231_v49, %v2037_v12  ;;  %v1255_v3 = vadd.f32 %v1232_v50, %v2045_v25  ;;  %v1284_v2 = vmul.f32 %v1275_v44, %v1259_v11 }
 0x43a   :  { %v1256_v52 = vadd.f32 %v1233_v60, %v2057_v42  ;;  %v1257_v9 = vadd.f32 %v1234_v53, %v2062_v54  ;;  %v1258_v10 = vadd.f32 %v1235_v55, %v2064_v58  ;;  %v1318_v13 = vmax.f32 %v1316_v61, %v1317_v62 }
 0x43b   :  { %v1319_v15 = vsel %vm1300_vm11, %v1299_v59, -inf  ;;  %vm1263_vm13 = vcmp.ge.f32.partialorder %v1251_v63, 0.0  ;;  %vm1264_vm15 = vcmp.ge.f32.partialorder %v1252_v0, 0.0  ;;  %vm1266_vm1 = vcmp.ge.f32.partialorder %v1254_v26, 0.0 }
 0x43c   :  { %vm1267_vm3 = vcmp.ge.f32.partialorder %v1255_v3, 0.0  ;;  %vm1268_vm4 = vcmp.ge.f32.partialorder %v1256_v52, 0.0  ;;  %vm1269_vm5 = vcmp.ge.f32.partialorder %v1257_v9, 0.0  ;;  %vm1270_vm6 = vcmp.ge.f32.partialorder %v1258_v10, 0.0 }
 0x43d   :  { %v1276_v5 = vmul.f32 %v1275_v44, %v1251_v63  ;;  %v1277_v16 = vmul.f32 %v1275_v44, %v1252_v0  ;;  %v1278_v24 = vmul.f32 %v1275_v44, %v1253_v4  ;;  %v1279_v12 = vmul.f32 %v1275_v44, %v1254_v26 }
 0x43e   :  { %v1280_v25 = vmul.f32 %v1275_v44, %v1255_v3  ;;  %v1281_v42 = vmul.f32 %v1275_v44, %v1256_v52  ;;  %v1282_v18 = vmul.f32 %v1275_v44, %v1257_v9  ;;  %vm1265_vm7 = vcmp.ge.f32.partialorder %v1253_v4, 0.0 }
 0x43f   :  { %v1283_v54 = vmul.f32 %v1275_v44, %v1258_v10  ;;  %v1288_v58 = vsel %vm1263_vm13, %v1251_v63, %v1276_v5  ;;  %v1289_v19 = vsel %vm1264_vm15, %v1252_v0, %v1277_v16  ;;  %v1320_v21 = vmax.f32 %v1318_v13, %v1319_v15 }
 0x440   :  { %v1291_v14 = vsel %vm1266_vm1, %v1254_v26, %v1279_v12  ;;  %v1292_v22 = vsel %vm1267_vm3, %v1255_v3, %v1280_v25  ;;  %v1294_v17 = vsel %vm1269_vm5, %v1257_v9, %v1282_v18  ;;  %v1296_v8 = vsel %vm1271_vm12, %v1259_v11, %v1284_v2  ;;  %v1441_v26 = vld [vmem:[%s2179_s2 + $0xb8] sm:$0xff]  ;;  %v1440_v3 = vld [vmem:[%s2179_s2 + $0xb0] sm:$0xff] }
 0x441   :  { %v1293_v27 = vsel %vm1268_vm4, %v1256_v52, %v1281_v42  ;;  %v1295_v28 = vsel %vm1270_vm6, %v1258_v10, %v1283_v54  ;;  %v1302_v30 = vsel %vm1300_vm11, %v1289_v19, -inf  ;;  %v1290_v31 = vsel %vm1265_vm7, %v1253_v4, %v1278_v24  ;;  %v1442_v4 = vld [vmem:[%s2179_s2 + $0xc0] sm:$0xff]  ;;  %v1350_v2 = vld [vmem:[%s2179_s2 + $0xd5] sm:$0x1]  ;;  %v1580_v42 = vld [vmem:[%s2179_s2 + $0xd6] ss:$0 sm:$0xff] }
 0x442   :  { %v1301_v32 = vsel %vm1300_vm11, %v1288_v58, -inf  ;;  %v1306_v33 = vsel %vm1300_vm11, %v1291_v14, -inf  ;;  %v1307_v7 = vsel %vm1300_vm11, %v1292_v22, -inf  ;;  %v1311_v35 = vsel %vm1300_vm11, %v1294_v17, -inf  ;;  %1730 = vmatpush3.msra.mxu1 %v1442_v4 }
 0x443   :  { %v1303_v34 = vmax.f32 %v1301_v32, %v1302_v30  ;;  %v1308_v29 = vmax.f32 %v1306_v33, %v1307_v7  ;;  %v1312_v37 = vsel %vm1300_vm11, %v1295_v28, -inf  ;;  %v1327_v38 = vrot.slane %v1320_v21, 7  ;;  %1731 = vmatprep.subr.mxu1 %v1762_v1 }
 0x444   :  { %v1309_v39 = vsel %vm1300_vm11, %v1293_v27, -inf  ;;  %v1313_v40 = vmax.f32 %v1311_v35, %v1312_v37  ;;  %v1314_v20 = vsel %vm1300_vm11, %v1296_v8, -inf  ;;  %v1304_v43 = vsel %vm1300_vm11, %v1290_v31, -inf  ;;  %1732 = vmatpush3.msra.mxu1 %v1441_v26 }
 0x445   :  { %v1310_v41 = vmax.f32 %v1308_v29, %v1309_v39  ;;  %v1305_v23 = vmax.f32 %v1303_v34, %v1304_v43  ;;  %1733 = vmatprep.subr.mxu1 %v1762_v1  ;;  %v1351_v52 = vmul.f32 2.0, %v1350_v2  ;;  %v1354_v9 = vsub.s32 0, %v1930_v6 }
 0x446   :  { %v1315_v36 = vmax.f32 %v1313_v40, %v1314_v20  ;;  %1734 = vmatpush3.msra.mxu1 %v1440_v3  ;;  %v1433_v15 = vstv %s1578_s9  ;;  %v1436_v5 = vstv %s1579_s10  ;;  %vm1522_vm0 = vcmask 58368  }
 0x447   :  { %v1325_v11 = vrot.slane %v1310_v41, 7  ;;  %v1355_v10 = vrot.slane %v1351_v52, %v1354_v9  ;;  %vm1539_vm9 = vcmask 326656  }
 0x448   :  { %v1328_v44 = vsel %vm1039_vm14, %v1327_v38, %v1315_v36 }
 0x449   :  { %v1326_v45 = vsel %vm1039_vm14, %v1325_v11, %v1305_v23  ;;  %v1339_v46 = vsel %vm1331_vm8, %v1328_v44, 0.0 }
 0x44a   :  { %v1332_v47 = vsel %vm1331_vm8, %v1326_v45, 0.0  ;;  %v1340_v48 = vrot.slane %v1339_v46, 4 }
 0x44b   :  { %v1333_v49 = vrot.slane %v1332_v47, 4 }
 0x44c   :  { %v1341_v50 = vadd.f32 %v1340_v48, %v1339_v46 }
 0x44d   :  { %v1334_v51 = vadd.f32 %v1333_v49, %v1332_v47 }
 0x44e   :  { %v1342_v53 = vrot.slane %v1341_v50, 2 }
 0x44f   :  { %v1335_v55 = vrot.slane %v1334_v51, 2 }
 0x450   :  { %v1343_v56 = vadd.f32 %v1342_v53, %v1341_v50 }
 0x451   :  { %v1336_v57 = vadd.f32 %v1335_v55, %v1334_v51 }
 0x452   :  { %v1344_v59 = vrot.slane %v1343_v56, 1 }
 0x453   :  { %v1337_v60 = vrot.slane %v1336_v57, 1 }
 0x454   :  { %v1345_v61 = vadd.f32 %v1344_v59, %v1343_v56 }
 0x455   :  { %v1338_v62 = vadd.f32 %v1337_v60, %v1336_v57 }
 0x456   :  { %v1358_v63 = vrot.slane %v1345_v61, 7 }
 0x458   :  { %v1359_v0 = vsel %vm1039_vm14, %v1358_v63, %v1338_v62  ;;  %vm1438_vm14 = vcmask 1040384  }
 0x459   :  { %1725 = vmatmul.mubr.msk.f32.vlgmr.msra.gmra.mxu0 %vm161_vm2, %v1359_v0 }
 0x519   :  { %v1428_v13 = vpop.f32.mrf.mxu0 }
 0x51a   :  { %v1429_v16 = vadd.f32 %v1428_v13, %v1355_v10 }
 0x51b   :  { %v1726_v24 = vpop.f32.mrf.mxu0 }
 0x51c   :  { %v1434_v12 = vmul.f32 %v1433_v15, %v1429_v16  ;;  %v1437_v25 = vmul.f32 %v1436_v5, %v1429_v16 }
 0x51e   :  { %v1439_v1 = vsel %vm1438_vm14, %v1434_v12, %v1437_v25 }
 0x51f   :  { %1534 = vrot.lane.b32.xlu1 %v1439_v1, %s1765_s11  ;;  %1736 = vmatmul.mubr.msk.f32.vlgmr.msra.gmra.mxu1 %vm161_vm2, %v1439_v1  ;;  %vm1537_vm2 = vcmask 64512  }
 0x591   :  { %v1535_v30 = vpop.permute.xlu1 %1534 }
 0x5df   :  { %v1518_v18 = vpop.f32.mrf.mxu1 }
 0x5e0   :  { %v1519_v6 = vadd.f32 %v1580_v42, %v1518_v18 }
 0x5e1   :  { %v1737_v54 = vpop.f32.mrf.mxu1 }
 0x5e2   :  { %v1523_v58 = vsel %vm1522_vm0, %v1519_v6, -inf }
 0x5e3   :  { %1524 = vmax.xlane.f32.xlu0 %v1523_v58 }
 0x66c   :  { %v1525_v19 = vpop.xlane.xlu0 %1524 }
 0x66d   :  { %v1526_v21 = vsub.f32 %v1519_v6, %v1525_v19 }
 0x66f   :  { %v1527_v14 = vmul.f32 1.442695, %v1526_v21 }
 0x671   :  { %1743 = vpow2.f32 %v1527_v14 }
 0x67e   :  { %v1744_v22 = vpop.eup %1743 }
 0x67f   :  { %v1529_v17 = vsel %vm1522_vm0, %v1744_v22, 0.0 }
 0x680   :  { %1530 = vadd.xlane.f32.xlu0 %v1529_v17 }
 0x709   :  { %v1531_v8 = vpop.xlane.xlu0 %1530 }
 0x70a   :  { %1745 = vrcp.f32 %v1531_v8 }
 0x717   :  { %v1746_v27 = vpop.eup %1745 }
 0x718   :  { %v1533_v28 = vmul.f32 %v1746_v27, %v1744_v22 }
 0x71a   :  { %v1538_v31 = vsel %vm1537_vm2, %v1533_v28, %v1535_v30 }
 0x71b   :  { %v1540_v32 = vsel %vm1539_vm9, %v1538_v31, 0.0 }
 0x71c   :  { %1541 = vst [vmem:[%s2180_s3] sm:$0x3] %v1540_v32 }
 0x71d   :  { %1546 = vsyncpa [#allocation3], 1 }

</bundles_post_ra>
